<compile_context>
chip_gen: v6e
topology: v6e:2x2x1
jax: 0.10.0
libtpu: 0.0.40
codegen_flags: <defaults>
</compile_context>

<pallas_src>
import math

import jax
import jax.numpy as jnp
from jax.experimental import pallas as pl
from jax.experimental.pallas import tpu as pltpu


def _round_up(a: int, m: int) -> int:
    return ((a + m - 1) // m) * m


def _round_down(a: int, m: int) -> int:
    return (a // m) * m


def _sublane_pack(dtype) -> int:
    """Native sublane packing for a dtype (rows per packed vreg tile)."""
    itemsize = jnp.dtype(dtype).itemsize
    return {4: 8, 2: 16, 1: 32}.get(itemsize, 8)


class PallasLambda:
    """Pallas-backed equivalent of the PyTorch Lambda module.

    Elementwise (shape-preserving) funcs run inside a tiled Pallas kernel on
    VPU/EUP over pipelined VMEM tiles; non-elementwise funcs (e.g. the
    tutorial's `x.view(N, -1)` flatten) are applied in plain JAX so the
    module's forward semantics are always preserved.
    """

    MAX_LANES = 1024          # slab lane width ceiling (multiple of 128)
    TILE_BYTES = 4 << 20      # ~4 MiB per (input or output) tile buffer
    VMEM_LIMIT = 48 << 20     # above scoped defaults; headroom under v7x 64 MiB

    def __init__(self, func):
        self.func = func

    # ------------------------------------------------------------------ #
    def __call__(self, x):
        orig_shape = x.shape
        total = math.prod(orig_shape) if orig_shape else 1
        in_dtype = x.dtype

        # ---- probe the func: must be shape-preserving to be kernelized ----
        try:
            out_abs = jax.eval_shape(
                self.func, jax.ShapeDtypeStruct(orig_shape, in_dtype)
            )
            shape_preserving = (out_abs.shape == orig_shape)
            out_dtype = out_abs.dtype
        except Exception:
            shape_preserving = True
            out_dtype = in_dtype

        if not shape_preserving or total < 8 * 128:
            # Non-elementwise lambdas (reshape/view, dim-mixing ops) or inputs
            # smaller than one vreg: apply directly, exactly like forward().
            return self.func(x)

        in_item = jnp.dtype(in_dtype).itemsize
        out_item = jnp.dtype(out_dtype).itemsize
        max_item = max(in_item, out_item)
        sublane = max(_sublane_pack(in_dtype), _sublane_pack(out_dtype))

        # ---- slab geometry: prefer zero-copy reshape (no pad / no slice) ----
        lane_candidates = (self.MAX_LANES, 512, 256, 128)
        lanes = None
        # 1) lanes that also leave rows a clean multiple of the sublane pack
        for cand in lane_candidates:
            if total % (cand * sublane) == 0:
                lanes = cand
                break
        # 2) lanes that at least divide total (ragged rows -> masked tail only)
        if lanes is None:
            for cand in lane_candidates:
                if total % cand == 0 and total // cand >= sublane:
                    lanes = cand
                    break
        needs_pad = lanes is None
        if needs_pad:
            # 3) truly ragged element count: pad to a 128-lane, sublane-aligned
            #    slab (rare path; keeps correctness, costs one extra HBM pass).
            lanes = 128
            rows = _round_up(pl.cdiv(total, lanes), sublane)
        else:
            rows = total // lanes
        padded_total = rows * lanes

        # ---- tile geometry: dtype-aware VMEM budget, >=2 tiles when possible --
        cap_rows = max(
            sublane, _round_down(self.TILE_BYTES // (lanes * max_item), sublane)
        )
        base_rows = rows if rows % sublane == 0 else _round_down(rows, sublane)
        tile_rows = min(cap_rows, base_rows)
        num_tiles = pl.cdiv(rows, tile_rows)
        if num_tiles == 1 and rows >= 2 * sublane:
            # v7x has 2 TensorCores; give the "parallel" axis at least 2 tiles.
            tile_rows = _round_up(pl.cdiv(rows, 2), sublane)
            num_tiles = pl.cdiv(rows, tile_rows)

        # ---- flatten to the slab (pad only on the rare ragged path) ----
        x_flat = x.reshape(-1)
        if needs_pad:
            # Padded zeros may produce inf/nan through `func`; they are sliced
            # off below and never reach the result.
            x_flat = jnp.pad(x_flat, (0, padded_total - total))
        x2 = x_flat.reshape(rows, lanes)

        func = self.func

        def kernel(x_ref, o_ref):
            o_ref[...] = func(x_ref[...]).astype(o_ref.dtype)

        # ---- cost estimate from the actual func (one-vreg probe, scaled) ----
        bytes_accessed = total * (in_item + out_item)
        try:
            probe = pl.estimate_cost(
                func, jax.ShapeDtypeStruct((sublane, 128), in_dtype)
            )
            scale = total / float(sublane * 128)
            cost = pl.CostEstimate(
                flops=int(probe.flops * scale),
                transcendentals=int(probe.transcendentals * scale),
                bytes_accessed=bytes_accessed,
            )
        except Exception:
            cost = pl.CostEstimate(
                flops=2 * total, transcendentals=0, bytes_accessed=bytes_accessed
            )

        out2 = pl.pallas_call(
            kernel,
            out_shape=jax.ShapeDtypeStruct((rows, lanes), out_dtype),
            grid=(num_tiles,),
            in_specs=[pl.BlockSpec((tile_rows, lanes), lambda i: (i, 0))],
            out_specs=pl.BlockSpec((tile_rows, lanes), lambda i: (i, 0)),
            compiler_params=pltpu.CompilerParams(
                # independent elementwise tiles -> shard across TCs on v7x
                dimension_semantics=("parallel",),
                vmem_limit_bytes=self.VMEM_LIMIT,
            ),
            cost_estimate=cost,
        )(x2)

        out_flat = out2.reshape(-1)
        if needs_pad:
            out_flat = out_flat[:total]
        return out_flat.reshape(orig_shape)


if __name__ == "__main__":
    key = jax.random.PRNGKey(0)

    # Example user-supplied elementwise func (deterministic, JAX-traceable).
    func = lambda t: t * jax.nn.sigmoid(t)  # SiLU, applied inside the kernel
    lam = PallasLambda(func)

    # Small NCHW input, consistent with typical Lambda usage in a conv stack.
    # 2048 elements -> lanes=256, rows=8, zero pad / zero slice.
    x = jax.random.normal(key, (2, 4, 16, 16), dtype=jnp.float32)
    y = jax.block_until_ready(lam(x))
    y_ref = func(x)
    assert y.shape == x.shape and y.dtype == x.dtype
    assert jnp.allclose(y, y_ref, atol=1e-5, rtol=1e-5)

    # Larger nicely-sized input -> multi-tile grid (2 tiles, v7x-friendly).
    x_big = jax.random.normal(jax.random.PRNGKey(2), (8, 16, 64, 64), dtype=jnp.float32)
    y_big = jax.block_until_ready(lam(x_big))
    assert jnp.allclose(y_big, func(x_big), atol=1e-5, rtol=1e-5)

    # Ragged element count -> fallback pad/slice path still correct.
    x_odd = jax.random.normal(jax.random.PRNGKey(1), (3, 5, 17, 23), dtype=jnp.float32)
    y_odd = jax.block_until_ready(lam(x_odd))
    assert y_odd.shape == x_odd.shape
    assert jnp.allclose(y_odd, func(x_odd), atol=1e-5, rtol=1e-5)

    # bf16 input exercises dtype-aware sublane packing (16-row tiles).
    x_bf = jax.random.normal(jax.random.PRNGKey(3), (2, 4, 16, 16), dtype=jnp.bfloat16)
    y_bf = jax.block_until_ready(lam(x_bf))
    assert y_bf.dtype == jnp.bfloat16
    assert jnp.allclose(
        y_bf.astype(jnp.float32), func(x_bf).astype(jnp.float32), atol=2e-2, rtol=2e-2
    )

    # Reshape-style Lambda (tutorial's `x.view(N, -1)`) -> plain-JAX fallback.
    # TODO(synk): pure reshapes have no compute, so they stay outside the kernel.
    flat = PallasLambda(lambda t: t.reshape(t.shape[0], -1))
    y_flat = jax.block_until_ready(flat(x))
    assert y_flat.shape == (2, 4 * 16 * 16)
    assert jnp.allclose(y_flat, x.reshape(2, -1))

    print("KERNEL_OK")
</pallas_src>

<mosaic_0001>
module attributes {stable_mosaic.version = 11 : i64} {
  func.func @kernel(%arg0: i32, %arg1: memref<8x256xf32, #tpu.memory_space<vmem>>, %arg2: memref<8x256xf32, #tpu.memory_space<vmem>>) attributes {dimension_semantics = [#tpu.dimension_semantics<parallel>], iteration_bounds = array<i64: 1>, scalar_prefetch = 0 : i64, scratch_operands = 0 : i64, tpu.core_type = #tpu.core_type<tc>, window_params = [{transform_indices = @transform_0, window_bounds = array<i64: 8, 256>}, {transform_indices = @transform_1, window_bounds = array<i64: 8, 256>}]} {
    %c0 = arith.constant 0 : index
    %c0_0 = arith.constant 0 : index
    %0 = vector.load %arg1[%c0, %c0_0] : memref<8x256xf32, #tpu.memory_space<vmem>>, vector<8x256xf32>
    %1 = arith.negf %0 : vector<8x256xf32>
    %2 = math.exp %1 : vector<8x256xf32>
    %cst = arith.constant 1.000000e+00 : f32
    %3 = vector.broadcast %cst : f32 to vector<8x256xf32>
    %4 = arith.addf %3, %2 : vector<8x256xf32>
    %5 = arith.divf %3, %4 : vector<8x256xf32>
    %6 = arith.mulf %0, %5 : vector<8x256xf32>
    %c0_1 = arith.constant 0 : index
    %c0_2 = arith.constant 0 : index
    %7 = vector.load %arg2[%c0_1, %c0_2] : memref<8x256xf32, #tpu.memory_space<vmem>>, vector<8x256xf32>
    tpu.vector_store %arg2[%c0_1, %c0_2], %6 {strides = array<i32>} : memref<8x256xf32, #tpu.memory_space<vmem>>, vector<8x256xf32>,
    return
  }
  func.func @transform_0(%arg0: i32) -> (i32, i32) {
    %c0_i32 = arith.constant 0 : i32
    %c0_i32_0 = arith.constant 0 : i32
    return %arg0, %c0_i32 : i32, i32
  }
  func.func @transform_1(%arg0: i32) -> (i32, i32) {
    %c0_i32 = arith.constant 0 : i32
    %c0_i32_0 = arith.constant 0 : i32
    return %arg0, %c0_i32 : i32, i32
  }
}

</mosaic_0001>

<bundles_post_ra>
// kernel: tpu_custom_call.1
= control target key start
LH: loop header
LB: loop body
LE: loop exit
PB: predicated region body
PF: predicated region fallthrough
CT: control target
= control target key end

     0   :  { %6 = vsyncpa [#allocation3], 0  ;;  %s128_s0 = inlined_call_operand.hbm [shape: f32[8,256], index: 0, kind: input, shape index: {}]   ;;  %s129_s1 = inlined_call_operand.hbm [shape: f32[8,256], index: 1, kind: output, shape index: {}]  }
   0x1   :  { %7 = vsyncpa [#allocation4], 0  ;;  %s110_s6 = smov [#allocation2]  }
   0x2   :  { %s14_s7 = sshll.u32 %s110_s6, 4  ;;  %s15_s7 = int_to_ptr.vmem [resolvable:$true] %s14_s7 }
   0x3   :  { %s74_s8 = scalar_lea.vmem %s15_s7, 256  ;;  %p79_p1 = scmp.lt.s32.totalorder %s15_s7, %s15_s7 }
   0x4   :  { %p75_p0 = scmp.ne.s32.totalorder %s15_s7, %s74_s8  ;;  %p80_p2 = scmp.lt.s32.totalorder %s74_s8, %s74_s8 }
   0x6   :  { %p81_p3 = por %p80_p2, %p79_p1 }
   0x8   :  { %p82_p4 = pnand %p81_p3, %p75_p0 }
   0xa   :  { %85 = shalt.err (!%p82_p4)
}
   0xb   :  { %17 = dma.hbm_to_vmem [thread:$0]  %s128_s0, 256, %s15_s7, [#allocation3]  }
   0xc   :  { %106 = dma.done.wait [#allocation3], 256  }
   0xd   :  { %107 = vsyncadd [#allocation3], 4294967040  ;;  %v21_v0 = vld [vmem:[#allocation2] sm:$0xff]  ;;  %v22_v1 = vld [vmem:[#allocation2 + $0x8] sm:$0xff]  ;;  %s111_s11 = smov [#allocation5]  }
   0xe   :  { %v54_v2 = vmul.f32 -1.442695, %v21_v0  ;;  %v55_v3 = vmul.f32 -1.442695, %v22_v1  ;;  %s45_s12 = sshll.u32 %s111_s11, 4  ;;  %s46_s12 = int_to_ptr.vmem [resolvable:$true] %s45_s12 }
   0xf   :  { %s86_s0 = scalar_lea.vmem %s46_s12, 256  ;;  %p91_p6 = scmp.lt.s32.totalorder %s46_s12, %s46_s12 }
  0x10   :  { %58 = vpow2.f32 %v54_v2  ;;  %p87_p5 = scmp.ne.s32.totalorder %s46_s12, %s86_s0  ;;  %p92_p7 = scmp.lt.s32.totalorder %s86_s0, %s86_s0 }
  0x11   :  { %60 = vpow2.f32 %v55_v3 }
  0x12   :  { %p93_p8 = por %p92_p7, %p91_p6 }
  0x14   :  { %p94_p9 = pnand %p93_p8, %p87_p5 }
  0x1d   :  { %v59_v4 = vpop.eup %58 }
  0x1e   :  { %v61_v5 = vpop.eup %60  ;;  %v29_v6 = vadd.f32 1.0, %v59_v4 }
  0x1f   :  { %v30_v7 = vadd.f32 1.0, %v61_v5 }
  0x20   :  { %62 = vrcp.f32 %v29_v6 }
  0x21   :  { %64 = vrcp.f32 %v30_v7 }
  0x2d   :  { %v63_v8 = vpop.eup %62 }
  0x2e   :  { %v65_v9 = vpop.eup %64  ;;  %v35_v10 = vmul.f32 %v63_v8, %v21_v0 }
  0x2f   :  { %v36_v11 = vmul.f32 %v65_v9, %v22_v1 }
  0x30   :  { %37 = vst [vmem:[#allocation5] sm:$0xff] %v35_v10 }
  0x31   :  { %38 = vst [vmem:[#allocation5 + $0x8] sm:$0xff] %v36_v11 }
  0x32   :  { %97 = shalt.err (!%p94_p9)
}
  0x33   :  { %48 = dma.vmem_to_hbm [thread:$0]  %s46_s12, 256, %s129_s1, [#allocation4]  }
  0x34   :  { %108 = dma.done.wait [#allocation4], 256  }
  0x35   :  { %109 = vsyncadd [#allocation4], 4294967040 }
  0x36   :  { %52 = vsyncpa [#allocation3], 1 }
  0x37   :  { %53 = vsyncpa [#allocation4], 1 }

</bundles_post_ra>
